<compile_context>
chip_gen: v5e
topology: v5e:2x2
jax: 0.10.0
libtpu: 0.0.40
codegen_flags: <defaults>
</compile_context>

<pallas_src>
import functools

import jax
import jax.numpy as jnp
from jax import lax
from jax.experimental import pallas as pl
from jax.experimental.pallas import tpu as pltpu


def _round_up(x, m):
    return ((x + m - 1) // m) * m


def _pick_vmem_limit():
    # v7x has 64 MiB VMEM per TensorCore, v5e/v6e have 128 MiB: size the scoped
    # limit per generation, leaving headroom.  Fallback is the conservative v7x
    # sizing that is known to compile everywhere.
    try:
        cap = int(pltpu.get_tpu_info().vmem_capacity_bytes)
        return min(int(cap * 0.85), 110 * 1024 * 1024)
    except Exception:
        return 48 * 1024 * 1024


# ----------------------------------------------------------------------------
# Kernel 1: patch embedding + cls token + positional embedding (one image/step)
# Patch rows are written sublane-aligned at row 0; cls token lives at row P
# inside the precomputed `tail` (cls + pos[0], then zero padding rows).
# ----------------------------------------------------------------------------
def _embed_kernel(patches_ref, w_ref, b_ref, pos_ref, tail_ref, o_ref):
    patches = patches_ref[0]                                      # (P, PD) bf16
    emb = jnp.dot(patches, w_ref[...],
                  preferred_element_type=jnp.float32) + b_ref[...]   # Linear(patch_dim, dim)
    # big piece starts at row 0 -> no sublane rotate; tail piece is tiny.
    o_ref[0] = jnp.concatenate([emb + pos_ref[...], tail_ref[...]], axis=0)


# ----------------------------------------------------------------------------
# Kernel 2: one full transformer layer per depth step for a tile of b_tile
# images; the output block is resident in VMEM across the depth grid axis and
# carries the residual stream.  Grid = (batch_tiles, depth).
# ----------------------------------------------------------------------------
def _layer_kernel(x_ref, ln1g_ref, ln1b_ref, wq_ref, wk_ref, wv_ref,
                  wo_ref, bo_ref, ln2g_ref, ln2b_ref,
                  w1_ref, b1_ref, w2_ref, b2_ref, o_ref,
                  *, heads, dim_head, n_valid):
    bt, Np, D = o_ref.shape
    inner = heads * dim_head
    Mrows = bt * Np
    scale = dim_head ** -0.5

    @pl.when(pl.program_id(1) == 0)
    def _():
        o_ref[...] = x_ref[...]

    # residual stream (f32), fold the batch tile into the row dim
    # (Np is a multiple of 8 -> leading-dim merge, no relayout).
    x = o_ref[...].reshape(Mrows, D)

    # hoisted parameter views
    g1, be1 = ln1g_ref[0], ln1b_ref[0]                            # (1, D)
    g2, be2 = ln2g_ref[0], ln2b_ref[0]
    bo = bo_ref[0]                                                # (1, D)
    bff1 = b1_ref[0]                                              # (1, mlp_dim)
    bff2 = b2_ref[0]                                              # (1, D)

    def layernorm(v, g, b):                                       # nn.LayerNorm(dim), eps=1e-5
        mu = jnp.mean(v, axis=-1, keepdims=True)
        var = jnp.mean(jnp.square(v - mu), axis=-1, keepdims=True)
        return (v - mu) * lax.rsqrt(var + 1e-5) * g + b

    # key-padding mask: padded key rows (>= n_valid) get a large negative bias.
    # Scores stay f32 everywhere, so -1e30 is safe (would overflow in bf16).
    k_idx = lax.broadcasted_iota(jnp.int32, (1, 1, Np), 2)
    key_bias = jnp.where(k_idx < n_valid, 0.0, -1e30).astype(jnp.float32)

    # ---- PreNorm + Attention + residual ----
    xn = layernorm(x, g1, be1).astype(jnp.bfloat16)
    q = jnp.dot(xn, wq_ref[0], preferred_element_type=jnp.float32)   # (Mrows, inner)
    k = jnp.dot(xn, wk_ref[0], preferred_element_type=jnp.float32)
    v = jnp.dot(xn, wv_ref[0], preferred_element_type=jnp.float32)

    outs = []
    for i in range(bt):                    # static unroll; images do not attend to each other
        s = i * Np
        qi = jnp.transpose(q[s:s + Np].reshape(Np, heads, dim_head),
                           (1, 0, 2)).astype(jnp.bfloat16)           # (heads, Np, dh)
        ki = jnp.transpose(k[s:s + Np].reshape(Np, heads, dim_head),
                           (1, 0, 2)).astype(jnp.bfloat16)
        vi = jnp.transpose(v[s:s + Np].reshape(Np, heads, dim_head),
                           (1, 0, 2)).astype(jnp.bfloat16)

        dots = jnp.einsum('hnd,hmd->hnm', qi, ki,
                          preferred_element_type=jnp.float32) * scale
        dots = dots + key_bias
        dots = dots - jnp.max(dots, axis=-1, keepdims=True)           # softmax(dim=-1), f32
        p = jnp.exp(dots)
        attn = p * pl.reciprocal(jnp.sum(p, axis=-1, keepdims=True), approx=True)

        oi = jnp.einsum('hnm,hmd->hnd', attn.astype(jnp.bfloat16), vi,
                        preferred_element_type=jnp.float32)           # (heads, Np, dh)
        outs.append(jnp.transpose(oi, (1, 0, 2)).reshape(Np, inner))  # 'h n d -> n (h d)'

    attn_out = outs[0] if bt == 1 else jnp.concatenate(outs, axis=0)  # (Mrows, inner)

    proj = jnp.dot(attn_out.astype(jnp.bfloat16), wo_ref[0],
                   preferred_element_type=jnp.float32) + bo
    x = x + proj

    # ---- PreNorm + FeedForward + residual ----
    xn2 = layernorm(x, g2, be2).astype(jnp.bfloat16)
    h1 = jnp.dot(xn2, w1_ref[0], preferred_element_type=jnp.float32) + bff1
    h1 = 0.5 * h1 * (1.0 + lax.erf(h1 * 0.7071067811865476))          # exact GELU (torch default)
    h2 = jnp.dot(h1.astype(jnp.bfloat16), w2_ref[0],
                 preferred_element_type=jnp.float32) + bff2
    o_ref[...] = (x + h2).reshape(bt, Np, D)
    # TODO(synk): nn.Dropout layers are identity (p=0.0 / eval); not translated.
    # TODO(synk): for ViT-L-class mlp_dim on v7x, additionally tile the FFN hidden dim.


# ----------------------------------------------------------------------------
# Wrapper
# ----------------------------------------------------------------------------
def vit_forward(img, params, *, patch_size, heads, dim_head, depth, b_tile=4):
    B, C, H, W = img.shape
    ph = pw = patch_size
    r, c = H // ph, W // pw
    P = r * c
    PD = C * ph * pw
    D = params['w_patch'].shape[1]
    N = P + 1                                   # patch tokens + cls token
    Np = _round_up(N, 8)                        # pad sequence length to sublane multiple
    inner = heads * dim_head
    Mff = params['w1'].shape[2]

    # batch tile: amortize per-layer weight DMA over several images, but keep
    # >=2 batch grid steps when possible so "parallel" can shard across 2 TCs (v7x).
    b_tile = max(1, min(b_tile, B))
    if B >= 2 and -(-B // b_tile) < 2:
        b_tile = (B + 1) // 2
    B_pad = _round_up(B, b_tile)

    # glue: 'b c (h p1) (w p2) -> b (h w) (p1 p2 c)'
    patches = img.reshape(B, C, r, ph, c, pw)
    patches = patches.transpose(0, 2, 4, 3, 5, 1).reshape(B, P, PD).astype(jnp.bfloat16)
    if B_pad > B:
        patches = jnp.concatenate(
            [patches, jnp.zeros((B_pad - B, P, PD), jnp.bfloat16)], axis=0)

    # reorder pos so patch tokens come first (rows 0..P-1), cls at row P.
    pos = params['pos'].astype(jnp.float32)                 # (N, D)
    pos_patch = pos[1:N]                                    # (P, D)
    tail = jnp.zeros((Np - P, D), jnp.float32).at[0].set(
        params['cls'][0].astype(jnp.float32) + pos[0])      # [cls + pos[0]; zero pad rows]

    x = pl.pallas_call(
        _embed_kernel,
        out_shape=jax.ShapeDtypeStruct((B_pad, Np, D), jnp.float32),
        grid=(B_pad,),
        in_specs=[
            pl.BlockSpec((1, P, PD), lambda b: (b, 0, 0)),
            pl.BlockSpec((PD, D), lambda b: (0, 0)),
            pl.BlockSpec((1, D), lambda b: (0, 0)),
            pl.BlockSpec((P, D), lambda b: (0, 0)),
            pl.BlockSpec((Np - P, D), lambda b: (0, 0)),
        ],
        out_specs=pl.BlockSpec((1, Np, D), lambda b: (b, 0, 0)),
        compiler_params=pltpu.CompilerParams(dimension_semantics=("parallel",)),
    )(patches, params['w_patch'], params['b_patch'], pos_patch, tail)

    kern = functools.partial(_layer_kernel, heads=heads, dim_head=dim_head, n_valid=N)
    x = pl.pallas_call(
        kern,
        out_shape=jax.ShapeDtypeStruct((B_pad, Np, D), jnp.float32),
        grid=(B_pad // b_tile, depth),
        in_specs=[
            pl.BlockSpec((b_tile, Np, D), lambda b, l: (b, 0, 0)),     # initial sequence
            pl.BlockSpec((1, 1, D), lambda b, l: (l, 0, 0)),           # ln1 gamma
            pl.BlockSpec((1, 1, D), lambda b, l: (l, 0, 0)),           # ln1 beta
            pl.BlockSpec((1, D, inner), lambda b, l: (l, 0, 0)),       # wq, bf16
            pl.BlockSpec((1, D, inner), lambda b, l: (l, 0, 0)),       # wk, bf16
            pl.BlockSpec((1, D, inner), lambda b, l: (l, 0, 0)),       # wv, bf16
            pl.BlockSpec((1, inner, D), lambda b, l: (l, 0, 0)),       # to_out weight, bf16
            pl.BlockSpec((1, 1, D), lambda b, l: (l, 0, 0)),           # to_out bias
            pl.BlockSpec((1, 1, D), lambda b, l: (l, 0, 0)),           # ln2 gamma
            pl.BlockSpec((1, 1, D), lambda b, l: (l, 0, 0)),           # ln2 beta
            pl.BlockSpec((1, D, Mff), lambda b, l: (l, 0, 0)),         # ff w1, bf16
            pl.BlockSpec((1, 1, Mff), lambda b, l: (l, 0, 0)),         # ff b1
            pl.BlockSpec((1, Mff, D), lambda b, l: (l, 0, 0)),         # ff w2, bf16
            pl.BlockSpec((1, 1, D), lambda b, l: (l, 0, 0)),           # ff b2
        ],
        out_specs=pl.BlockSpec((b_tile, Np, D), lambda b, l: (b, 0, 0)),
        compiler_params=pltpu.CompilerParams(
            dimension_semantics=("parallel", "arbitrary"),
            vmem_limit_bytes=_pick_vmem_limit()),
    )(x, params['ln1_g'], params['ln1_b'], params['wq'], params['wk'],
      params['wv'], params['wo'], params['bo'], params['ln2_g'], params['ln2_b'],
      params['w1'], params['b1'], params['w2'], params['b2'])

    # recover: drop cls (row P) + batch/seq padding, 'b (h w) c -> b c h w'
    return x[:B, :P, :].reshape(B, r, c, D).transpose(0, 3, 1, 2)


def init_params(key, *, channels, patch_size, dim, depth, heads, dim_head,
                mlp_dim, num_patches):
    patch_dim = channels * patch_size * patch_size
    inner = heads * dim_head
    keys = jax.random.split(key, 11)

    def nrm(k, shape, dtype=jnp.float32, s=0.02):
        return (s * jax.random.normal(k, shape)).astype(dtype)

    bf = jnp.bfloat16
    return dict(
        w_patch=nrm(keys[0], (patch_dim, dim), bf),
        b_patch=nrm(keys[1], (1, dim)),
        cls=nrm(keys[2], (1, dim)),
        pos=nrm(keys[3], (num_patches + 1, dim)),
        ln1_g=jnp.ones((depth, 1, dim), jnp.float32),
        ln1_b=jnp.zeros((depth, 1, dim), jnp.float32),
        wq=nrm(keys[4], (depth, dim, inner), bf),
        wk=nrm(keys[5], (depth, dim, inner), bf),
        wv=nrm(keys[6], (depth, dim, inner), bf),
        wo=nrm(keys[7], (depth, inner, dim), bf),
        bo=nrm(keys[8], (depth, 1, dim)),
        ln2_g=jnp.ones((depth, 1, dim), jnp.float32),
        ln2_b=jnp.zeros((depth, 1, dim), jnp.float32),
        w1=nrm(keys[9], (depth, dim, mlp_dim), bf),
        b1=jnp.zeros((depth, 1, mlp_dim), jnp.float32),
        w2=nrm(keys[10], (depth, mlp_dim, dim), bf),
        b2=jnp.zeros((depth, 1, dim), jnp.float32),
    )


if __name__ == "__main__":
    B, C, H, W = 2, 3, 16, 16
    patch_size = 8
    dim, depth, heads, dim_head, mlp_dim = 32, 2, 4, 16, 64
    r, c = H // patch_size, W // patch_size
    num_patches = r * c

    key = jax.random.PRNGKey(0)
    k_img, k_par = jax.random.split(key)
    img = jax.random.normal(k_img, (B, C, H, W), jnp.float32)
    params = init_params(k_par, channels=C, patch_size=patch_size, dim=dim,
                         depth=depth, heads=heads, dim_head=dim_head,
                         mlp_dim=mlp_dim, num_patches=num_patches)

    out = vit_forward(img, params, patch_size=patch_size, heads=heads,
                      dim_head=dim_head, depth=depth)
    jax.block_until_ready(out)
    assert out.shape == (B, dim, r, c), out.shape
    assert bool(jnp.all(jnp.isfinite(out)))
    print("KERNEL_OK")
</pallas_src>

<mosaic_0001>
module attributes {stable_mosaic.version = 11 : i64} {
  func.func @_embed_kernel(%arg0: i32, %arg1: memref<1x4x192xbf16, #tpu.memory_space<vmem>>, %arg2: memref<192x32xbf16, #tpu.memory_space<vmem>>, %arg3: memref<1x32xf32, #tpu.memory_space<vmem>>, %arg4: memref<4x32xf32, #tpu.memory_space<vmem>>, %arg5: memref<4x32xf32, #tpu.memory_space<vmem>>, %arg6: memref<1x8x32xf32, #tpu.memory_space<vmem>>) attributes {dimension_semantics = [#tpu.dimension_semantics<parallel>], iteration_bounds = array<i64: 2>, scalar_prefetch = 0 : i64, scratch_operands = 0 : i64, tpu.core_type = #tpu.core_type<tc>, window_params = [{transform_indices = @transform_0, window_bounds = array<i64: 1, 4, 192>}, {pipeline_mode = #tpu.pipeline_mode<synchronous>, transform_indices = @transform_1, window_bounds = array<i64: 192, 32>}, {pipeline_mode = #tpu.pipeline_mode<synchronous>, transform_indices = @transform_2, window_bounds = array<i64: 1, 32>}, {pipeline_mode = #tpu.pipeline_mode<synchronous>, transform_indices = @transform_3, window_bounds = array<i64: 4, 32>}, {pipeline_mode = #tpu.pipeline_mode<synchronous>, transform_indices = @transform_4, window_bounds = array<i64: 4, 32>}, {transform_indices = @transform_5, window_bounds = array<i64: 1, 8, 32>}]} {
    %c0 = arith.constant 0 : index
    %c0_0 = arith.constant 0 : index
    %c0_1 = arith.constant 0 : index
    %0 = vector.load %arg1[%c0, %c0_0, %c0_1] : memref<1x4x192xbf16, #tpu.memory_space<vmem>>, vector<1x4x192xbf16>
    %1 = vector.shape_cast %0 : vector<1x4x192xbf16> to vector<4x192xbf16>
    %c0_2 = arith.constant 0 : index
    %c0_3 = arith.constant 0 : index
    %2 = vector.load %arg2[%c0_2, %c0_3] : memref<192x32xbf16, #tpu.memory_space<vmem>>, vector<192x32xbf16>
    %cst = arith.constant dense<0.000000e+00> : vector<4x32xf32>
    %3 = tpu.matmul %1, %2, %cst {dimension_numbers = #tpu.dot_dimension_numbers<[1], [0], [0], [1], [0, 0, 1, 1], [], []>} : vector<4x192xbf16>, vector<192x32xbf16>, vector<4x32xf32> -> vector<4x32xf32>
    %c0_4 = arith.constant 0 : index
    %c0_5 = arith.constant 0 : index
    %4 = vector.load %arg3[%c0_4, %c0_5] : memref<1x32xf32, #tpu.memory_space<vmem>>, vector<1x32xf32>
    %5 = vector.broadcast %4 : vector<1x32xf32> to vector<4x32xf32>
    %6 = arith.addf %3, %5 : vector<4x32xf32>
    %c0_6 = arith.constant 0 : index
    %c0_7 = arith.constant 0 : index
    %7 = vector.load %arg4[%c0_6, %c0_7] : memref<4x32xf32, #tpu.memory_space<vmem>>, vector<4x32xf32>
    %8 = arith.addf %6, %7 : vector<4x32xf32>
    %c0_8 = arith.constant 0 : index
    %c0_9 = arith.constant 0 : index
    %9 = vector.load %arg5[%c0_8, %c0_9] : memref<4x32xf32, #tpu.memory_space<vmem>>, vector<4x32xf32>
    %10 = tpu.concatenate %8, %9 in 0 : vector<4x32xf32>, vector<4x32xf32> -> vector<8x32xf32>
    %c0_10 = arith.constant 0 : index
    %c0_11 = arith.constant 0 : index
    %c0_12 = arith.constant 0 : index
    %11 = vector.load %arg6[%c0_10, %c0_11, %c0_12] : memref<1x8x32xf32, #tpu.memory_space<vmem>>, vector<1x8x32xf32>
    %12 = vector.shape_cast %11 : vector<1x8x32xf32> to vector<8x32xf32>
    %13 = vector.shape_cast %10 : vector<8x32xf32> to vector<1x8x32xf32>
    tpu.vector_store %arg6[%c0_10, %c0_11, %c0_12], %13 {strides = array<i32>} : memref<1x8x32xf32, #tpu.memory_space<vmem>>, vector<1x8x32xf32>,
    return
  }
  func.func @transform_0(%arg0: i32) -> (i32, i32, i32) {
    %c0_i32 = arith.constant 0 : i32
    %c0_i32_0 = arith.constant 0 : i32
    %c0_i32_1 = arith.constant 0 : i32
    return %arg0, %c0_i32, %c0_i32_0 : i32, i32, i32
  }
  func.func @transform_1(%arg0: i32) -> (i32, i32) {
    %c0_i32 = arith.constant 0 : i32
    %c0_i32_0 = arith.constant 0 : i32
    %c0_i32_1 = arith.constant 0 : i32
    return %c0_i32, %c0_i32_0 : i32, i32
  }
  func.func @transform_2(%arg0: i32) -> (i32, i32) {
    %c0_i32 = arith.constant 0 : i32
    %c0_i32_0 = arith.constant 0 : i32
    %c0_i32_1 = arith.constant 0 : i32
    return %c0_i32, %c0_i32_0 : i32, i32
  }
  func.func @transform_3(%arg0: i32) -> (i32, i32) {
    %c0_i32 = arith.constant 0 : i32
    %c0_i32_0 = arith.constant 0 : i32
    %c0_i32_1 = arith.constant 0 : i32
    return %c0_i32, %c0_i32_0 : i32, i32
  }
  func.func @transform_4(%arg0: i32) -> (i32, i32) {
    %c0_i32 = arith.constant 0 : i32
    %c0_i32_0 = arith.constant 0 : i32
    %c0_i32_1 = arith.constant 0 : i32
    return %c0_i32, %c0_i32_0 : i32, i32
  }
  func.func @transform_5(%arg0: i32) -> (i32, i32, i32) {
    %c0_i32 = arith.constant 0 : i32
    %c0_i32_0 = arith.constant 0 : i32
    %c0_i32_1 = arith.constant 0 : i32
    return %arg0, %c0_i32, %c0_i32_0 : i32, i32, i32
  }
}

</mosaic_0001>

<bundles_post_ra>
// kernel: tpu_custom_call.1
= control target key start
LH: loop header
LB: loop body
LE: loop exit
PB: predicated region body
PF: predicated region fallthrough
CT: control target
= control target key end

     0   :  { %10 = vsyncpa [#allocation3], 0  ;;  %s781_s0 = inlined_call_operand.vmem [shape: bf16[2,4,192], index: 0, kind: input, shape index: {}]   ;;  %s782_s1 = inlined_call_operand.vmem [shape: bf16[192,32], index: 1, kind: input, shape index: {}]   ;;  %s783_s2 = inlined_call_operand.vmem [shape: f32[1,32], index: 2, kind: input, shape index: {}]   ;;  %s784_s3 = inlined_call_operand.vmem [shape: f32[4,32], index: 3, kind: input, shape index: {}]   ;;  %s785_s4 = inlined_call_operand.vmem [shape: f32[4,32], index: 4, kind: input, shape index: {}]   ;;  %s786_s5 = inlined_call_operand.hbm [shape: f32[2,8,32], index: 5, kind: output, shape index: {}]  }
   0x1   :  { %12 = vsyncpa [#allocation3 + $0x1], 0  ;;  %s651_s18 = smov 0   ;;  %s653_s19 = smov 0  }
   0x2   :  { %s655_s20 = smov 0   ;;  %s657_s21 = smov 0  }
   0x3 LB: > { %s672_s22 = sadd.s32 4294967295, %s619_s21   ;;  %s444_s23 = sadd.s32 4294967294, %s619_s21   ;;  %s619_s21 = sphi %s657_s21, %s792_s21   ;;  %s615_s20 = sphi %s655_s20, %s791_s20   ;;  %s611_s19 = sphi %s653_s19, %s790_s19   ;;  %s607_s18 = sphi %s651_s18, %s789_s18  }
   0x4   : > { %s676_s24 = sadd.s32 1, %s619_s21   ;;  %s135_s25 = sadd.s32 1, %s615_s20 }
   0x5   : > { %s132_s26 = ssub.s32 %s619_s21, %s676_s24  ;;  %p145_p0 = scmp.ne.s32.totalorder %s615_s20, %s611_s19 }
   0x6   : > { %p133_p1 = scmp.eq.s32.totalorder %s132_s26, 0  ;;  %p146_p2 = scmp.eq.s32.totalorder %s672_s22, 1 }
   0x7   : > { %p151_p3 = scmp.ne.s32.totalorder %s611_s19, %s607_s18  ;;  %p152_p4 = scmp.eq.s32.totalorder %s444_s23, 1 }
   0x8   : > { %s687_s27 = scalar_select %p133_p1, %s615_s20, %s135_s25  }
   0x9   : > { %p689_p5 = por %p146_p2, %p145_p0  ;;  %p693_p6 = por %p152_p4, %p151_p3 }
   0xa   : > { %p447_p7 = scmp.ge.s32.totalorder %s619_s21, 1  ;;  %p190_p8 = scmp.lt.s32.totalorder %s619_s21, 3 }
   0xc   : > { %p191_p9 = pnand %p447_p7, %p190_p8 }
   0xd   : > { %p218_p10 = scmp.lt.s32.totalorder (!%p191_p9), %s672_s22, 1  ;;  %s215_s23 = sand.u32 (!%p191_p9), 1, %s611_s19  }
   0xe   : > { %194 = sbr.rel (%p191_p9) target bundleno = 187 (0xbb), region = 40  ;;  %s448_s30 = sshll.u32 (!%p191_p9), %s215_s23, 3 }
   0xf   : > { %s501_s6 = sshll.u32 (!%p191_p9), %s672_s22, 3  ;;  %s370_s16 = scalar_lea.sflag (!%p191_p9), [#allocation3], %s215_s23 }
  0x13   : > { %v512_v0 = vld [vmem:[%s782_s1 + $0x38] sm:$0xff]  ;;  %v511_v2 = vld [vmem:[%s782_s1 + $0x30] sm:$0xff]  ;;  %s219_s11 = scalar_select %p218_p10, %s672_s22, 1  ;;  %v510_v4 = vld [vmem:[%s782_s1 + $0x28] sm:$0xff]  ;;  %vm330_vm0 = vcmask 523264   ;;  %vm365_vm1 = vcmask 1043456  }
  0x14   : > { %v516_v1 = vld [vmem:[%s782_s1 + $0x58] sm:$0xff]  ;;  %333 = vmatpush.bf16.msra.mxu0 %v512_v0  ;;  %v515_v3 = vld [vmem:[%s782_s1 + $0x50] sm:$0xff]  ;;  %v514_v6 = vld [vmem:[%s782_s1 + $0x48] sm:$0xff]  ;;  %vm367_vm2 = vcmask 261120  }
  0x15   : > { %350 = vmatpush.bf16.msra.mxu1 %v516_v1  ;;  %s504_s14 = sshll.u32 %s219_s11, 2  ;;  %v509_v7 = vld [vmem:[%s782_s1 + $0x20] sm:$0xff]  ;;  %v508_v9 = vld [vmem:[%s782_s1 + $0x18] sm:$0xff]  ;;  %v507_v11 = vld [vmem:[%s782_s1 + $0x10] sm:$0xff]  ;;  %s380_s11 = scalar_lea.hbm %s786_s5, %s501_s6 }
  0x16   : > { %s222_s17 = scalar_lea.vmem %s781_s0, %s504_s14  ;;  %v513_v8 = vld [vmem:[%s782_s1 + $0x40] sm:$0xff]  ;;  %v506_v12 = vld [vmem:[%s782_s1 + $0x8] sm:$0xff]  ;;  %s217_s14 = scalar_lea.vmem [#allocation2], %s448_s30 }
  0x17   : > { %v224_v5 = vld [vmem:[%s222_s17] sm:$0xf]  ;;  %s382_s15 = sshll.u32 %s217_s14, 4  ;;  %s384_s22 = sshll.u32 %s380_s11, 4  ;;  %s383_s15 = int_to_ptr.vmem [resolvable:$true] %s382_s15  ;;  %s385_s22 = int_to_ptr.hbm [resolvable:$true] %s384_s22 }
  0x18   : > { %334 = vmatpush.bf16.msra.mxu0 %v511_v2  ;;  %254 = vst [vmem:[#allocation1] ss:$4 sm:$0xff] %v224_v5  ;;  %v505_v13 = vld [vmem:[%s782_s1] sm:$0xff]  ;;  %s571_s17 = sshra.s32 %s385_s22, 4  ;;  %s577_s6 = scalar_lea.hbm %s786_s5, 16  ;;  %s572_s17 = int_to_ptr.hbm [resolvable:$true] %s571_s17 }
  0x19   : > { %351 = vmatpush.bf16.msra.mxu1 %v515_v3  ;;  %v556_v17 = vld [vmem:[%s783_s2] ss:$0 sm:$0xff]  ;;  %s573_s25 = scalar_lea.hbm %s572_s17, 8  ;;  %p578_p0 = scmp.lt.s32.totalorder %s572_s17, %s786_s5 }
  0x1a   : > { %v361_v19 = vld [vmem:[%s785_s4] sm:$0xf]  ;;  %p574_p11 = scmp.ne.s32.totalorder %s572_s17, %s573_s25  ;;  %p579_p1 = scmp.lt.s32.totalorder %s577_s6, %s573_s25 }
  0x1b   : > { %v359_v21 = vld [vmem:[%s784_s3] sm:$0xf]  ;;  %v363_v23 = vrot.slane %v361_v19, 4 }
  0x1c   : > { %335 = vmatpush.bf16.msra.mxu0 %v510_v4  ;;  %p575_p12 = pnand %p574_p11, %p689_p5  ;;  %p580_p2 = por %p579_p1, %p578_p0 }
  0x1d   : > { %352 = vmatpush.bf16.msra.mxu1 %v514_v6 }
  0x1e   : > { %p576_p13 = pneg %p575_p12 }
  0x1f   : > { %v256_v10 = vld.sshfl [vmem:[#allocation1 + $0x8] sm:$0xff pattern:$0x73625140]  ;;  %v255_v14 = vld.sshfl [vmem:[#allocation1] sm:$0xff pattern:$0x73625140] }
  0x20   : > { %336 = vmatpush.bf16.msra.mxu0 %v509_v7  ;;  %p581_p3 = pnand %p580_p2, %p576_p13 }
  0x21   : > { %353 = vmatpush.bf16.msra.mxu1 %v513_v8 }
  0x24   : > { %337 = vmatpush.bf16.msra.mxu0 %v508_v9  ;;  %499 = vmatmul.msk.bf16.vlgmr.msra.gmra.mxu1 %vm330_vm0, %v256_v10 }
  0x28   : > { %338 = vmatpush.bf16.msra.mxu0 %v507_v11 }
  0x2c   : > { %339 = vmatpush.bf16.msra.mxu0 %v506_v12 }
  0x30   : > { %340 = vmatpush.bf16.msra.mxu0 %v505_v13 }
  0x33   : > { %341 = vmatmul.bf16.vlgmr.msra.gmra.mxu0 %v255_v14 }
  0xa1   : > { %v355_v15 = vpop.f32.mrf.mxu1 }
  0xa9   : > { %v357_v16 = vpop.f32.mrf.mxu1 }
  0xb0   : > { %v342_v18 = vpop.f32.mrf.mxu0 }
  0xb1   : > { %v343_v20 = vadd.f32 %v556_v17, %v342_v18 }
  0xb3   : > { %v356_v22 = vadd.f32 %v355_v15, %v343_v20 }
  0xb5   : > { %v360_v24 = vadd.f32 %v359_v21, %v356_v22 }
  0xb7   : > { %v366_v25 = vsel %vm365_vm1, %v360_v24, %v363_v23 }
  0xb8   : > { %v344_v26 = vpop.f32.mrf.mxu0  ;;  %368 = vst.msk [vmem:[%s217_s14] sm:$0xff] %vm367_vm2, %v366_v25 }
  0xb9   : > { %584 = shalt.err (!%p581_p3)
}
  0xba   : > { %517 = dma.vmem_to_hbm [thread:$0]  (%p689_p5), %s383_s15, 128, %s385_s22, %s370_s16  }
  0xbb PF: > { %p523_p4 = scmp.ge.s32.totalorder %s619_s21, 2  ;;  %s396_s23 = sand.u32 1, %s607_s18  }
  0xbc   : > { %s397_s9 = scalar_lea.sflag [#allocation3], %s396_s23 }
  0xbd   : > { %p520_p7 = pnand %p523_p4, %p693_p6 }
  0xbf   : > { %p521_p8 = pneg %p520_p7 }
  0xc1   : > { %602 = dma.done.wait (%p521_p8), %s397_s9, 128  }
  0xc2   : > { %604 = vsyncadd (%p521_p8), %s397_s9, 4294967168  ;;  %p15_p9 = scmp.ge.s32.totalorder %s676_s24, 4   ;;  %s789_s18 = smov %s611_s19 }
  0xc3   : > { %s790_s19 = smov %s615_s20  ;;  %s791_s20 = smov %s687_s27 }
  0xc4   : > { %s792_s21 = smov %s676_s24  ;;  %17 = sbr.rel (!%p15_p9) target bundleno = 3 (0x3), region = 75 }
  0xc9   :  { %403 = vsyncpa [#allocation3], 1 }
  0xca   :  { %405 = vsyncpa [#allocation3 + $0x1], 1 }

</bundles_post_ra>
